<compile_context>
chip_gen: v5e
topology: v5e:2x2
jax: 0.10.0
libtpu: 0.0.40
codegen_flags: <defaults>
</compile_context>

<pallas_src>
import functools

import jax
import jax.numpy as jnp
from jax import lax
from jax.experimental import pallas as pl
from jax.experimental.pallas import tpu as pltpu

_EPS = 1e-12             # F.normalize eps
_EPS_SQ = _EPS * _EPS    # clamp applied to the sum of squares (still normal f32)
_LANE = 128
_SUBLANE = 8


def _cosine_classifier_kernel(x_ref, w_ref, o_ref, *, inv_scale, prescale_rows):
    """One (tn, tc) output tile of  normalize(x) @ w_norm.T  (* 1/scale).

    x_ref: (tn, H) native dtype; w_ref: (tc, H) pre-normalized weight slab.
    """
    x = x_ref[...]
    w = w_ref[...]

    xf = x.astype(jnp.float32)
    # 1 / max(||x||, eps)  ==  rsqrt(max(sum(x^2), eps^2))   (EUP, no divide).
    r = lax.rsqrt(jnp.maximum(jnp.sum(xf * xf, axis=-1, keepdims=True),
                              jnp.float32(_EPS_SQ)))
    if inv_scale != 1.0:                       # trace-time elision (non-CE path)
        r = r * jnp.float32(inv_scale)

    if prescale_rows:
        # c_pad > nhid: cheaper to scale the rows of x before the matmul.
        xs = (xf * r).astype(x.dtype)
        o_ref[...] = lax.dot_general(
            xs, w, dimension_numbers=(((1,), (1,)), ((), ())),
            preferred_element_type=jnp.float32).astype(o_ref.dtype)
    else:
        # nhid >= c_pad: scale the (tn, tc) matmul result instead.
        s = lax.dot_general(
            x, w, dimension_numbers=(((1,), (1,)), ((), ())),
            preferred_element_type=jnp.float32)
        o_ref[...] = (s * r).astype(o_ref.dtype)


def prepare_classifier_weights(fc_weight, lane=_LANE):
    """Once per weight update: row-normalize fc.weight (F.normalize semantics),
    fold the inverse norms into the slab, and zero-pad nclass to a lane multiple
    so the kernel's output store stays lane-dense. Padded rows are exactly 0."""
    c, h = fc_weight.shape
    c_pad = ((c + lane - 1) // lane) * lane
    wf = fc_weight.astype(jnp.float32)
    inv = lax.rsqrt(jnp.maximum(jnp.sum(wf * wf, axis=1, keepdims=True),
                                jnp.float32(_EPS_SQ)))
    w_norm = (wf * inv).astype(fc_weight.dtype)
    return jnp.zeros((c_pad, h), fc_weight.dtype).at[:c].set(w_norm)


def _row_tile(n):
    if n < _LANE:
        return max(_SUBLANE, ((n + _SUBLANE - 1) // _SUBLANE) * _SUBLANE)
    try:
        kind = jax.devices()[0].device_kind.lower()
    except Exception:
        kind = ""
    is_v5e = ("v5e" in kind) or ("v5 lite" in kind) or ("v5lite" in kind)
    if n >= 256 and not is_v5e:
        return 256      # v6e/v7x MXU is 2x256x256; amortizes per-step overhead
    return 128          # v5e MXU is 4x128x128; also the small-N default


def _col_tile(c_pad, nhid, itemsize, budget_bytes=8 << 20):
    """Full weight resident unless that would crowd VMEM (matters on v7x's
    64 MiB); then tile C so the grid also gets >1 parallel step along C."""
    if c_pad * nhid * itemsize <= budget_bytes:
        return c_pad
    tc = max(_LANE, (budget_bytes // (nhid * itemsize)) // _LANE * _LANE)
    return min(tc, c_pad)


def base_classifier_forward(spt_embedding_i, fc_weight, loss_type, scale=0.1,
                            prepared=None, force_backend=None):
    """JAX/Pallas equivalent of BaseClassifier.forward."""
    n, nhid = spt_embedding_i.shape
    nclass, nhid_w = fc_weight.shape
    assert nhid == nhid_w

    if prepared is None:
        prepared = prepare_classifier_weights(fc_weight)
    w_pad = prepared
    c_pad = w_pad.shape[0]

    inv_scale = (1.0 / scale) if loss_type == 'crossentropy' else 1.0

    # Degenerate shapes: Pallas dispatch overhead dominates -> plain XLA.
    tiny = (n * nhid <= _SUBLANE * _LANE) and (n * c_pad <= _SUBLANE * _LANE)
    backend = force_backend or ('jnp' if tiny else 'pallas')
    if backend == 'jnp':
        xf = spt_embedding_i.astype(jnp.float32)
        r = lax.rsqrt(jnp.maximum(jnp.sum(xf * xf, axis=1, keepdims=True),
                                  jnp.float32(_EPS_SQ))) * jnp.float32(inv_scale)
        return (xf * r) @ w_pad[:nclass].astype(jnp.float32).T

    tn = _row_tile(n)
    itemsize = jnp.dtype(w_pad.dtype).itemsize
    tc = _col_tile(c_pad, nhid, itemsize)

    kernel = functools.partial(_cosine_classifier_kernel,
                               inv_scale=inv_scale,
                               prescale_rows=(c_pad > nhid))

    cost = pl.CostEstimate(
        flops=2 * n * c_pad * nhid,
        transcendentals=n,
        bytes_accessed=(n * nhid + c_pad * nhid) * itemsize + n * c_pad * 4)

    out = pl.pallas_call(
        kernel,
        out_shape=jax.ShapeDtypeStruct((n, c_pad), jnp.float32),
        grid=(pl.cdiv(n, tn), pl.cdiv(c_pad, tc)),
        in_specs=[
            pl.BlockSpec((tn, nhid), lambda i, j: (i, 0)),   # x row tile
            pl.BlockSpec((tc, nhid), lambda i, j: (j, 0)),   # pre-normalized w tile
        ],
        out_specs=pl.BlockSpec((tn, tc), lambda i, j: (i, j)),
        compiler_params=pltpu.CompilerParams(
            dimension_semantics=("parallel", "parallel")),
        cost_estimate=cost,
    )(spt_embedding_i, w_pad)

    return out[:, :nclass]


def _reference(spt_embedding_i, fc_weight, loss_type, scale=0.1):
    eps = 1e-12
    xn = spt_embedding_i / jnp.maximum(
        jnp.linalg.norm(spt_embedding_i, axis=1, keepdims=True), eps)
    wn = fc_weight / jnp.maximum(
        jnp.linalg.norm(fc_weight, axis=1, keepdims=True), eps)
    wf = xn @ wn.T
    if loss_type == 'crossentropy':
        wf = wf / scale
    return wf


if __name__ == "__main__":
    key = jax.random.PRNGKey(0)
    k_x, k_w, k_x2, k_w2 = jax.random.split(key, 4)

    # Small but non-trivial episode: 200 support embeddings, nhid=64, 20-way
    # classifier. 200 is not a multiple of the 128-row tile, so this exercises
    # the no-wrapper-padding / partial-last-block path.
    N, NHID, NCLASS = 200, 64, 20
    spt_embedding_i = jax.random.normal(k_x, (N, NHID), dtype=jnp.float32)
    # nn.Linear(nhid, nclass, bias=False).weight has shape (nclass, nhid)
    fc_weight = jax.random.normal(k_w, (NCLASS, NHID), dtype=jnp.float32) * 0.1

    # Weight-side normalization precomputed once per weight update.
    prepared = prepare_classifier_weights(fc_weight)

    out_ce = base_classifier_forward(spt_embedding_i, fc_weight,
                                     loss_type='crossentropy', scale=0.1,
                                     prepared=prepared)
    out_other = base_classifier_forward(spt_embedding_i, fc_weight,
                                        loss_type='other', scale=0.1,
                                        prepared=prepared)
    jax.block_until_ready((out_ce, out_other))

    ref_ce = _reference(spt_embedding_i, fc_weight, 'crossentropy', 0.1)
    ref_other = _reference(spt_embedding_i, fc_weight, 'other', 0.1)

    assert out_ce.shape == (N, NCLASS) and out_other.shape == (N, NCLASS)
    assert jnp.allclose(out_ce, ref_ce, atol=1e-4, rtol=1e-4)
    assert jnp.allclose(out_other, ref_other, atol=1e-4, rtol=1e-4)

    # Degenerate shape (dispatch-overhead bound): auto-dispatches to plain XLA.
    x_small = jax.random.normal(k_x2, (8, 32), dtype=jnp.float32)
    w_small = jax.random.normal(k_w2, (16, 32), dtype=jnp.float32) * 0.1
    out_small = base_classifier_forward(x_small, w_small,
                                        loss_type='crossentropy', scale=0.1)
    jax.block_until_ready(out_small)
    assert jnp.allclose(out_small, _reference(x_small, w_small, 'crossentropy', 0.1),
                        atol=1e-4, rtol=1e-4)

    print("KERNEL_OK")
</pallas_src>

<mosaic_0001>
module attributes {stable_mosaic.version = 11 : i64} {
  func.func @_cosine_classifier_kernel(%arg0: i32, %arg1: i32, %arg2: memref<128x64xf32, #tpu.memory_space<vmem>>, %arg3: memref<128x64xf32, #tpu.memory_space<vmem>>, %arg4: memref<128x128xf32, #tpu.memory_space<vmem>>) attributes {dimension_semantics = [#tpu.dimension_semantics<parallel>, #tpu.dimension_semantics<parallel>], iteration_bounds = array<i64: 2, 1>, scalar_prefetch = 0 : i64, scratch_operands = 0 : i64, tpu.core_type = #tpu.core_type<tc>, window_params = [{transform_indices = @transform_0, window_bounds = array<i64: 128, 64>}, {transform_indices = @transform_1, window_bounds = array<i64: 128, 64>}, {transform_indices = @transform_2, window_bounds = array<i64: 128, 128>}]} {
    %c0 = arith.constant 0 : index
    %c0_0 = arith.constant 0 : index
    %0 = vector.load %arg2[%c0, %c0_0] : memref<128x64xf32, #tpu.memory_space<vmem>>, vector<128x64xf32>
    %c0_1 = arith.constant 0 : index
    %c0_2 = arith.constant 0 : index
    %1 = vector.load %arg3[%c0_1, %c0_2] : memref<128x64xf32, #tpu.memory_space<vmem>>, vector<128x64xf32>
    %2 = arith.mulf %0, %0 : vector<128x64xf32>
    %cst = arith.constant dense<0.000000e+00> : vector<128xf32>
    %3 = vector.multi_reduction <add>, %2, %cst [1] : vector<128x64xf32> to vector<128xf32>
    %4 = vector.shape_cast %3 : vector<128xf32> to vector<128x1xf32>
    %cst_3 = arith.constant 1.000000e-24 : f32
    %5 = vector.broadcast %cst_3 : f32 to vector<128x1xf32>
    %6 = arith.maximumf %4, %5 : vector<128x1xf32>
    %7 = math.rsqrt %6 : vector<128x1xf32>
    %cst_4 = arith.constant 1.000000e+01 : f32
    %8 = vector.broadcast %cst_4 : f32 to vector<128x1xf32>
    %9 = arith.mulf %7, %8 : vector<128x1xf32>
    %10 = vector.broadcast %9 : vector<128x1xf32> to vector<128x64xf32>
    %11 = arith.mulf %0, %10 : vector<128x64xf32>
    %cst_5 = arith.constant dense<0.000000e+00> : vector<128x128xf32>
    %12 = tpu.matmul %11, %1, %cst_5 {dimension_numbers = #tpu.dot_dimension_numbers<[1], [1], [0], [0], [0, 0, 1, 0], [], []>} : vector<128x64xf32>, vector<128x64xf32>, vector<128x128xf32> -> vector<128x128xf32>
    %c0_6 = arith.constant 0 : index
    %c0_7 = arith.constant 0 : index
    %13 = vector.load %arg4[%c0_6, %c0_7] : memref<128x128xf32, #tpu.memory_space<vmem>>, vector<128x128xf32>
    tpu.vector_store %arg4[%c0_6, %c0_7], %12 {strides = array<i32>} : memref<128x128xf32, #tpu.memory_space<vmem>>, vector<128x128xf32>,
    return
  }
  func.func @transform_0(%arg0: i32, %arg1: i32) -> (i32, i32) {
    %c0_i32 = arith.constant 0 : i32
    %c0_i32_0 = arith.constant 0 : i32
    return %arg0, %c0_i32 : i32, i32
  }
  func.func @transform_1(%arg0: i32, %arg1: i32) -> (i32, i32) {
    %c0_i32 = arith.constant 0 : i32
    %c0_i32_0 = arith.constant 0 : i32
    return %arg1, %c0_i32 : i32, i32
  }
  func.func @transform_2(%arg0: i32, %arg1: i32) -> (i32, i32) {
    %c0_i32 = arith.constant 0 : i32
    return %arg0, %arg1 : i32, i32
  }
}

</mosaic_0001>

<bundles_post_ra>
// kernel: tpu_custom_call.1
= control target key start
LH: loop header
LB: loop body
LE: loop exit
PB: predicated region body
PF: predicated region fallthrough
CT: control target
= control target key end

     0   :  { %7 = vsyncpa [#allocation3], 0  ;;  %s1764_s0 = inlined_call_operand.vmem [shape: f32[200,64], index: 0, kind: input, shape index: {}]   ;;  %s1765_s1 = inlined_call_operand.vmem [shape: f32[128,64], index: 1, kind: input, shape index: {}]   ;;  %s1766_s2 = inlined_call_operand.hbm [shape: f32[200,128], index: 2, kind: output, shape index: {}]  }
   0x1   :  { %9 = vsyncpa [#allocation3 + $0x1], 0  ;;  %s1094_s9 = smov 0   ;;  %s1096_s10 = smov 0  }
   0x2   :  { %s1098_s11 = smov 0   ;;  %s1100_s12 = smov 0  }
   0x3   :  { %s1102_s13 = smov 0   ;;  %s1104_s14 = smov 0  }
   0x4 LB: > { %s798_s15 = sadd.s32 4294967295, %s1074_s14   ;;  %s799_s16 = sadd.s32 4294967294, %s1074_s14   ;;  %s1074_s14 = sphi %s1104_s14, %s15_s14   ;;  %s1070_s13 = sphi %s1102_s13, %s1792_s13   ;;  %s1066_s12 = sphi %s1100_s12, %s1791_s12   ;;  %s1062_s11 = sphi %s1098_s11, %s1790_s11   ;;  %s1058_s10 = sphi %s1096_s10, %s1789_s10   ;;  %s1054_s9 = sphi %s1094_s9, %s1788_s9  }
   0x5   : > { %s27_s17 = sadd.s32 1, %s1070_s13  ;;  %s88_s18 = sadd.s32 1, %s1062_s11 }
   0x6   : > { %p29_p0 = scmp.ge.s32.totalorder %s27_s17, 2  ;;  %p98_p1 = scmp.ne.s32.totalorder %s1062_s11, %s1058_s10 }
   0x7   : > { %p99_p2 = scmp.eq.s32.totalorder %s798_s15, 1  ;;  %p104_p3 = scmp.ne.s32.totalorder %s1058_s10, %s1054_s9 }
   0x8   : > { %s1794_s17 = smov (%p29_p0, %s27_s17), 0  ;;  %p105_p5 = scmp.eq.s32.totalorder %s799_s16, 1 }
   0x9   : > { %p1134_p4 = por %p99_p2, %p98_p1  ;;  %s83_s20 = ssub.s32 %s1070_s13, %s1794_s17 }
   0xa   : > { %p803_p6 = scmp.ge.s32.totalorder %s1074_s14, 1  ;;  %p86_p7 = scmp.eq.s32.totalorder %s83_s20, 0 }
   0xb   : > { %p1141_p8 = por %p105_p5, %p104_p3  ;;  %p149_p9 = scmp.lt.s32.totalorder %s1074_s14, 3 }
   0xc   : > { %s1147_s22 = scalar_select %p86_p7, %s1062_s11, %s88_s18  }
   0xd   : > { %p150_p10 = pnand %p803_p6, %p149_p9 }
   0xe   : > { %s1150_s23 = sshll.u32 (!%p150_p10), %s1066_s12, 4  ;;  %s177_s27 = sand.u32 (!%p150_p10), 1, %s1058_s10  }
   0xf   : > { %153 = sbr.rel (%p150_p10) target bundleno = 373 (0x175), region = 28  ;;  %p185_p11 = scmp.lt.s32.totalorder (!%p150_p10), %s1150_s23, 24 }
  0x10   : > { %s1698_s30 = scalar_lea.sflag (!%p150_p10), [#allocation3], %s177_s27 }
  0x14   : > { %s186_s24 = scalar_select %p185_p11, %s1150_s23, 24  ;;  %vm253_vm0 = vcmask 523264   ;;  %v236_v21 = vld [vmem:[%s1765_s1 + $0x78] sm:$0xff]  ;;  %v235_v25 = vld [vmem:[%s1765_s1 + $0x70] sm:$0xff]  ;;  %v234_v31 = vld [vmem:[%s1765_s1 + $0x68] sm:$0xff] }
  0x15   : > { %807 = vmatpush.xpose.msk.msra.mxu0 %vm253_vm0, %v236_v21  ;;  %850 = vmatpush.xpose.msk.msra.mxu2 %vm253_vm0, %v236_v21  ;;  %v233_v36 = vld [vmem:[%s1765_s1 + $0x60] sm:$0xff]  ;;  %v232_v42 = vld [vmem:[%s1765_s1 + $0x58] sm:$0xff]  ;;  %v231_v47 = vld [vmem:[%s1765_s1 + $0x50] sm:$0xff]  ;;  %s696_s3 = ssub.s32 (%p1134_p4), 25, %s1150_s23 }
  0x16   : > { %s806_s25 = sshll.u32 %s186_s24, 3  ;;  %849 = vmatpush.xpose.msk.msra.mxu1 %vm253_vm0, %v236_v21  ;;  %851 = vmatpush.xpose.msk.msra.mxu3 %vm253_vm0, %v236_v21  ;;  %v230_v52 = vld [vmem:[%s1765_s1 + $0x48] sm:$0xff]  ;;  %v229_v54 = vld [vmem:[%s1765_s1 + $0x40] sm:$0xff]  ;;  %v228_v56 = vld [vmem:[%s1765_s1 + $0x38] sm:$0xff]  ;;  %p697_p12 = scmp.lt.s32.totalorder (%p1134_p4), %s696_s3, 16 }
  0x17   : > { %s1157_s28 = scalar_lea.vmem %s1764_s0, %s806_s25  ;;  %v227_v57 = vld [vmem:[%s1765_s1 + $0x30] sm:$0xff]  ;;  %v226_v58 = vld [vmem:[%s1765_s1 + $0x28] sm:$0xff]  ;;  %v225_v59 = vld [vmem:[%s1765_s1 + $0x20] sm:$0xff] }
  0x18   : > { %v1160_v0 = vld [vmem:[%s1157_s28 + $0x48] sm:$0xff]  ;;  %v1163_v1 = vld [vmem:[%s1157_s28 + $0x40] sm:$0xff]  ;;  %v1196_v18 = vld [vmem:[%s1157_s28 + $0x50] sm:$0xff] }
  0x19   : > { %v1166_v2 = vld [vmem:[%s1157_s28] sm:$0xff]  ;;  %v246_v3 = vmul.f32 %v1160_v0, %v1160_v0  ;;  %v245_v4 = vmul.f32 %v1163_v1, %v1163_v1  ;;  %v1175_v6 = vld [vmem:[%s1157_s28 + $0x68] sm:$0xff]  ;;  %v247_v22 = vmul.f32 %v1196_v18, %v1196_v18  ;;  %808 = vmatpush.xpose.msk.msra.mxu0 %vm253_vm0, %v235_v25  ;;  %v1225_v29 = vld [vmem:[%s1157_s28 + $0x30] sm:$0xff]  ;;  %853 = vmatpush.xpose.msk.msra.mxu2 %vm253_vm0, %v235_v25 }
  0x1a   : > { %v237_v5 = vmul.f32 %v1166_v2, %v1166_v2  ;;  %v1178_v7 = vld [vmem:[%s1157_s28 + $0x60] sm:$0xff]  ;;  %v250_v12 = vmul.f32 %v1175_v6, %v1175_v6  ;;  %v1199_v19 = vld [vmem:[%s1157_s28 + $0x8] sm:$0xff]  ;;  %v1228_v30 = vld [vmem:[%s1157_s28 + $0x70] sm:$0xff]  ;;  %852 = vmatpush.xpose.msk.msra.mxu1 %vm253_vm0, %v235_v25  ;;  %854 = vmatpush.xpose.msk.msra.mxu3 %vm253_vm0, %v235_v25  ;;  %v243_v33 = vmul.f32 %v1225_v29, %v1225_v29 }
  0x1b   : > { %v281_v8 = vsel %vm253_vm0, %v246_v3, 0.0  ;;  %v278_v9 = vsel %vm253_vm0, %v245_v4, 0.0  ;;  %v1184_v11 = vld [vmem:[%s1157_s28 + $0x20] sm:$0xff]  ;;  %v249_v13 = vmul.f32 %v1178_v7, %v1178_v7  ;;  %v1202_v20 = vld [vmem:[%s1157_s28 + $0x28] sm:$0xff]  ;;  %v238_v23 = vmul.f32 %v1199_v19, %v1199_v19  ;;  %v1236_v32 = vld [vmem:[%s1157_s28 + $0x10] sm:$0xff] }
  0x1c   : > { %v254_v10 = vsel %vm253_vm0, %v237_v5, 0.0  ;;  %282 = vadd.xlane.f32.xlu2 %v281_v8  ;;  %279 = vadd.xlane.f32.xlu0 %v278_v9  ;;  %v241_v14 = vmul.f32 %v1184_v11, %v1184_v11  ;;  %v293_v15 = vsel %vm253_vm0, %v250_v12, 0.0  ;;  %v242_v24 = vmul.f32 %v1202_v20, %v1202_v20  ;;  %v1257_v40 = vld [vmem:[%s1157_s28 + $0x18] sm:$0xff]  ;;  %v223_v61 = vld [vmem:[%s1765_s1 + $0x10] sm:$0xff]  ;;  %v222_v62 = vld [vmem:[%s1765_s1 + $0x8] sm:$0xff] }
  0x1d   : > { %255 = vadd.xlane.f32.xlu1 %v254_v10  ;;  %v290_v16 = vsel %vm253_vm0, %v249_v13, 0.0  ;;  %v284_v26 = vsel %vm253_vm0, %v247_v22, 0.0  ;;  %v257_v27 = vsel %vm253_vm0, %v238_v23, 0.0  ;;  %v251_v34 = vmul.f32 %v1228_v30, %v1228_v30  ;;  %809 = vmatpush.xpose.msk.msra.mxu0 %vm253_vm0, %v234_v31  ;;  %v1260_v41 = vld [vmem:[%s1157_s28 + $0x58] sm:$0xff]  ;;  %v221_v63 = vld [vmem:[%s1765_s1] sm:$0xff] }
  0x1e   : > { %v266_v17 = vsel %vm253_vm0, %v241_v14, 0.0  ;;  %v269_v28 = vsel %vm253_vm0, %v242_v24, 0.0  ;;  %v239_v35 = vmul.f32 %v1236_v32, %v1236_v32  ;;  %856 = vmatpush.xpose.msk.msra.mxu2 %vm253_vm0, %v234_v31  ;;  %855 = vmatpush.xpose.msk.msra.mxu1 %vm253_vm0, %v234_v31  ;;  %v272_v37 = vsel %vm253_vm0, %v243_v33, 0.0  ;;  %v1268_v43 = vld [vmem:[%s1157_s28 + $0x78] sm:$0xff] }
  0x1f   : > { %857 = vmatpush.xpose.msk.msra.mxu3 %vm253_vm0, %v234_v31  ;;  %v296_v38 = vsel %vm253_vm0, %v251_v34, 0.0  ;;  %v240_v44 = vmul.f32 %v1257_v40, %v1257_v40  ;;  %v248_v45 = vmul.f32 %v1260_v41, %v1260_v41  ;;  %v252_v46 = vmul.f32 %v1268_v43, %v1268_v43  ;;  %v1289_v51 = vld [vmem:[%s1157_s28 + $0x38] sm:$0xff]  ;;  %s804_s28 = sshll.u32 %s177_s27, 7 }
  0x20   : > { %v260_v39 = vsel %vm253_vm0, %v239_v35, 0.0  ;;  %v244_v53 = vmul.f32 %v1289_v51, %v1289_v51  ;;  %v224_v60 = vld [vmem:[%s1765_s1 + $0x18] sm:$0xff]  ;;  %s1678_s29 = scalar_lea.vmem [#allocation2], %s804_s28 }
  0x21   : > { %810 = vmatpush.xpose.msk.msra.mxu0 %vm253_vm0, %v233_v36  ;;  %v263_v48 = vsel %vm253_vm0, %v240_v44, 0.0  ;;  %v287_v49 = vsel %vm253_vm0, %v248_v45, 0.0  ;;  %v299_v50 = vsel %vm253_vm0, %v252_v46, 0.0 }
  0x22   : > { %859 = vmatpush.xpose.msk.msra.mxu2 %vm253_vm0, %v233_v36  ;;  %858 = vmatpush.xpose.msk.msra.mxu1 %vm253_vm0, %v233_v36  ;;  %v275_v55 = vsel %vm253_vm0, %v244_v53, 0.0 }
  0x23   : > { %860 = vmatpush.xpose.msk.msra.mxu3 %vm253_vm0, %v233_v36 }
  0x24   : > { %294 = vadd.xlane.f32.xlu2 %v293_v15  ;;  %291 = vadd.xlane.f32.xlu0 %v290_v16 }
  0x25   : > { %267 = vadd.xlane.f32.xlu1 %v266_v17  ;;  %811 = vmatpush.xpose.msk.msra.mxu0 %vm253_vm0, %v232_v42 }
  0x26   : > { %862 = vmatpush.xpose.msk.msra.mxu2 %vm253_vm0, %v232_v42  ;;  %861 = vmatpush.xpose.msk.msra.mxu1 %vm253_vm0, %v232_v42 }
  0x27   : > { %863 = vmatpush.xpose.msk.msra.mxu3 %vm253_vm0, %v232_v42 }
  0x29   : > { %812 = vmatpush.xpose.msk.msra.mxu0 %vm253_vm0, %v231_v47 }
  0x2a   : > { %865 = vmatpush.xpose.msk.msra.mxu2 %vm253_vm0, %v231_v47  ;;  %864 = vmatpush.xpose.msk.msra.mxu1 %vm253_vm0, %v231_v47 }
  0x2b   : > { %866 = vmatpush.xpose.msk.msra.mxu3 %vm253_vm0, %v231_v47 }
  0x2c   : > { %285 = vadd.xlane.f32.xlu2 %v284_v26  ;;  %258 = vadd.xlane.f32.xlu0 %v257_v27 }
  0x2d   : > { %270 = vadd.xlane.f32.xlu1 %v269_v28  ;;  %813 = vmatpush.xpose.msk.msra.mxu0 %vm253_vm0, %v230_v52 }
  0x2e   : > { %868 = vmatpush.xpose.msk.msra.mxu2 %vm253_vm0, %v230_v52  ;;  %867 = vmatpush.xpose.msk.msra.mxu1 %vm253_vm0, %v230_v52 }
  0x2f   : > { %869 = vmatpush.xpose.msk.msra.mxu3 %vm253_vm0, %v230_v52 }
  0x31   : > { %814 = vmatpush.xpose.msk.msra.mxu0 %vm253_vm0, %v229_v54 }
  0x32   : > { %871 = vmatpush.xpose.msk.msra.mxu2 %vm253_vm0, %v229_v54  ;;  %870 = vmatpush.xpose.msk.msra.mxu1 %vm253_vm0, %v229_v54 }
  0x33   : > { %872 = vmatpush.xpose.msk.msra.mxu3 %vm253_vm0, %v229_v54 }
  0x34   : > { %273 = vadd.xlane.f32.xlu2 %v272_v37  ;;  %297 = vadd.xlane.f32.xlu0 %v296_v38 }
  0x35   : > { %261 = vadd.xlane.f32.xlu1 %v260_v39  ;;  %815 = vmatpush.xpose.msk.msra.mxu0 %vm253_vm0, %v228_v56 }
  0x36   : > { %874 = vmatpush.xpose.msk.msra.mxu2 %vm253_vm0, %v228_v56  ;;  %873 = vmatpush.xpose.msk.msra.mxu1 %vm253_vm0, %v228_v56 }
  0x37   : > { %875 = vmatpush.xpose.msk.msra.mxu3 %vm253_vm0, %v228_v56 }
  0x39   : > { %816 = vmatpush.xpose.msk.msra.mxu0 %vm253_vm0, %v227_v57 }
  0x3a   : > { %877 = vmatpush.xpose.msk.msra.mxu2 %vm253_vm0, %v227_v57  ;;  %876 = vmatpush.xpose.msk.msra.mxu1 %vm253_vm0, %v227_v57 }
  0x3b   : > { %878 = vmatpush.xpose.msk.msra.mxu3 %vm253_vm0, %v227_v57 }
  0x3c   : > { %264 = vadd.xlane.f32.xlu2 %v263_v48  ;;  %288 = vadd.xlane.f32.xlu0 %v287_v49 }
  0x3d   : > { %300 = vadd.xlane.f32.xlu1 %v299_v50  ;;  %817 = vmatpush.xpose.msk.msra.mxu0 %vm253_vm0, %v226_v58 }
  0x3e   : > { %880 = vmatpush.xpose.msk.msra.mxu2 %vm253_vm0, %v226_v58  ;;  %879 = vmatpush.xpose.msk.msra.mxu1 %vm253_vm0, %v226_v58 }
  0x3f   : > { %881 = vmatpush.xpose.msk.msra.mxu3 %vm253_vm0, %v226_v58 }
  0x41   : > { %818 = vmatpush.xpose.msk.msra.mxu0 %vm253_vm0, %v225_v59 }
  0x42   : > { %883 = vmatpush.xpose.msk.msra.mxu2 %vm253_vm0, %v225_v59  ;;  %882 = vmatpush.xpose.msk.msra.mxu1 %vm253_vm0, %v225_v59 }
  0x43   : > { %884 = vmatpush.xpose.msk.msra.mxu3 %vm253_vm0, %v225_v59 }
  0x44   : > { %276 = vadd.xlane.f32.xlu0 %v275_v55 }
  0x45   : > { %819 = vmatpush.xpose.msk.msra.mxu0 %vm253_vm0, %v224_v60 }
  0x46   : > { %886 = vmatpush.xpose.msk.msra.mxu2 %vm253_vm0, %v224_v60  ;;  %885 = vmatpush.xpose.msk.msra.mxu1 %vm253_vm0, %v224_v60 }
  0x47   : > { %887 = vmatpush.xpose.msk.msra.mxu3 %vm253_vm0, %v224_v60 }
  0x49   : > { %820 = vmatpush.xpose.msk.msra.mxu0 %vm253_vm0, %v223_v61 }
  0x4a   : > { %889 = vmatpush.xpose.msk.msra.mxu2 %vm253_vm0, %v223_v61  ;;  %888 = vmatpush.xpose.msk.msra.mxu1 %vm253_vm0, %v223_v61 }
  0x4b   : > { %890 = vmatpush.xpose.msk.msra.mxu3 %vm253_vm0, %v223_v61 }
  0x4d   : > { %821 = vmatpush.xpose.msk.msra.mxu0 %vm253_vm0, %v222_v62 }
  0x4e   : > { %892 = vmatpush.xpose.msk.msra.mxu2 %vm253_vm0, %v222_v62  ;;  %891 = vmatpush.xpose.msk.msra.mxu1 %vm253_vm0, %v222_v62 }
  0x4f   : > { %893 = vmatpush.xpose.msk.msra.mxu3 %vm253_vm0, %v222_v62 }
  0x51   : > { %822 = vmatpush.xpose.msk.msra.mxu0 %vm253_vm0, %v221_v63 }
  0x52   : > { %895 = vmatpush.xpose.msk.msra.mxu2 %vm253_vm0, %v221_v63  ;;  %894 = vmatpush.xpose.msk.msra.mxu1 %vm253_vm0, %v221_v63 }
  0x53   : > { %896 = vmatpush.xpose.msk.msra.mxu3 %vm253_vm0, %v221_v63 }
  0x8f   : > { %v283_v3 = vpop.xlane.xlu2 %282  ;;  %v280_v4 = vpop.xlane.xlu0 %279 }
  0x90   : > { %v1367_v5 = vmax.f32 %v283_v3, 1e-24  ;;  %v1369_v8 = vmax.f32 %v280_v4, 1e-24  ;;  %v256_v9 = vpop.xlane.xlu1 %255 }
  0x91   : > { %v302_v10 = vmax.f32 %v256_v9, 1e-24 }
  0x92   : > { %953 = vrsqrt.f32 %v1367_v5  ;;  %vm414_vm5 = vweird.f32 %v1367_v5  ;;  %vm404_vm6 = vweird.f32 %v1369_v8 }
  0x93   : > { %955 = vrsqrt.f32 %v1369_v8  ;;  %vm324_vm2 = vweird.f32 %v302_v10 }
  0x94   : > { %957 = vrsqrt.f32 %v302_v10 }
  0x97   : > { %v295_v12 = vpop.xlane.xlu2 %294  ;;  %v292_v13 = vpop.xlane.xlu0 %291 }
  0x98   : > { %v1373_v14 = vpop.eup %953  ;;  %v1375_v15 = vmax.f32 %v295_v12, 1e-24  ;;  %v1377_v16 = vmax.f32 %v292_v13, 1e-24  ;;  %v268_v17 = vpop.xlane.xlu1 %267 }
  0x99   : > { %v1379_v21 = vpop.eup %955  ;;  %v409_v22 = vmul.f32 %v1373_v14, %v1367_v5  ;;  %v1383_v23 = vmax.f32 %v268_v17, 1e-24  ;;  %vm415_vm7 = vweird.f32 %v1373_v14 }
  0x9a   : > { %v958_v24 = vpop.eup %957  ;;  %v399_v25 = vmul.f32 %v1379_v21, %v1369_v8  ;;  %959 = vrsqrt.f32 %v1375_v15  ;;  %vm405_vm3 = vweird.f32 %v1379_v21  ;;  %vm444_vm10 = vweird.f32 %v1377_v16  ;;  %vm1452_vm12 = vmor %vm414_vm5, %vm415_vm7 }
  0x9b   : > { %v319_v26 = vmul.f32 %v958_v24, %v302_v10  ;;  %961 = vrsqrt.f32 %v1377_v16  ;;  %v410_v27 = vmul.f32 %v1373_v14, %v409_v22  ;;  %vm325_vm1 = vweird.f32 %v958_v24  ;;  %vm1427_vm8 = vmor %vm404_vm6, %vm405_vm3 }
  0x9c   : > { %v400_v28 = vmul.f32 %v1379_v21, %v399_v25  ;;  %963 = vrsqrt.f32 %v1383_v23  ;;  %vm326_vm4 = vmor %vm324_vm2, %vm325_vm1  ;;  %vm364_vm11 = vweird.f32 %v1383_v23  ;;  %vm454_vm1 = vweird.f32 %v1375_v15 }
  0x9d   : > { %v320_v31 = vmul.f32 %v958_v24, %v319_v26  ;;  %v411_v38 = vmul.f32 0.5, %v410_v27 }
  0x9e   : > { %v401_v33 = vmul.f32 0.5, %v400_v28 }
  0x9f   : > { %v321_v34 = vmul.f32 0.5, %v320_v31  ;;  %v286_v35 = vpop.xlane.xlu2 %285  ;;  %v259_v36 = vpop.xlane.xlu0 %258  ;;  %v412_v55 = vsub.f32 1.5, %v411_v38 }
  0xa0   : > { %v1392_v37 = vpop.eup %959  ;;  %v1394_v39 = vmax.f32 %v286_v35, 1e-24  ;;  %v1396_v42 = vmax.f32 %v259_v36, 1e-24  ;;  %v271_v44 = vpop.xlane.xlu1 %270  ;;  %v402_v46 = vsub.f32 1.5, %v401_v33 }
  0xa1   : > { %v1398_v45 = vpop.eup %961  ;;  %v322_v47 = vsub.f32 1.5, %v321_v34  ;;  %v449_v48 = vmul.f32 %v1392_v37, %v1375_v15  ;;  %v1415_v59 = vmax.f32 %v271_v44, 1e-24  ;;  %v413_v12 = vmul.f32 %v1373_v14, %v412_v55 }
  0xa2   : > { %v1402_v49 = vpop.eup %963  ;;  %v439_v50 = vmul.f32 %v1398_v45, %v1377_v16  ;;  %965 = vrsqrt.f32 %v1394_v39  ;;  %v403_v57 = vmul.f32 %v1379_v21, %v402_v46  ;;  %vm445_vm14 = vweird.f32 %v1398_v45 }
  0xa3   : > { %v323_v52 = vmul.f32 %v958_v24, %v322_v47  ;;  %v450_v53 = vmul.f32 %v1392_v37, %v449_v48  ;;  %v359_v54 = vmul.f32 %v1402_v49, %v1383_v23  ;;  %967 = vrsqrt.f32 %v1396_v42  ;;  %vm1502_vm6 = vmor %vm444_vm10, %vm445_vm14 }
  0xa4   : > { %v440_v56 = vmul.f32 %v1398_v45, %v439_v50  ;;  %969 = vrsqrt.f32 %v1415_v59  ;;  %vm365_vm9 = vweird.f32 %v1402_v49  ;;  %v407_v27 = vsel %vm1427_vm8, %v1379_v21, %v403_v57 }
  0xa5   : > { %v360_v58 = vmul.f32 %v1402_v49, %v359_v54  ;;  %v327_v60 = vsel %vm326_vm4, %v958_v24, %v323_v52  ;;  %v451_v63 = vmul.f32 0.5, %v450_v53  ;;  %vm1460_vm13 = vmor %vm364_vm11, %vm365_vm9  ;;  %v486_v5 = vmul.f32 10.0, %v407_v27 }
  0xa6   : > { %v441_v61 = vmul.f32 0.5, %v440_v56  ;;  %v478_v62 = vmul.f32 10.0, %v327_v60  ;;  %v417_v38 = vsel %vm1452_vm12, %v1373_v14, %v413_v12  ;;  %vm334_vm15 = vweird.f32 %v1396_v42 }
  0xa7   : > { %v361_v3 = vmul.f32 0.5, %v360_v58  ;;  %v274_v4 = vpop.xlane.xlu2 %273  ;;  %v298_v9 = vpop.xlane.xlu0 %297  ;;  %v452_v21 = vsub.f32 1.5, %v451_v63  ;;  %vm455_vm2 = vweird.f32 %v1392_v37  ;;  %vm374_vm3 = vweird.f32 %v1415_v59 }
  0xa8   : > { %v1422_v10 = vpop.eup %965  ;;  %v1431_v8 = vmax.f32 %v274_v4, 1e-24  ;;  %v1433_v17 = vmax.f32 %v298_v9, 1e-24  ;;  %v262_v22 = vpop.xlane.xlu1 %261  ;;  %v494_v24 = vmul.f32 %v478_v62, %v1166_v2  ;;  %v442_v31 = vsub.f32 1.5, %v441_v61 }
  0xa9   : > { %v362_v25 = vsub.f32 1.5, %v361_v3  ;;  %v419_v26 = vmul.f32 %v1422_v10, %v1394_v39  ;;  %v1442_v28 = vpop.eup %967  ;;  %v1465_v36 = vmax.f32 %v262_v22, 1e-24  ;;  %v1483_v14 = vmul.f32 %v1392_v37, %v452_v21 }
  0xaa   : > { %971 = vrsqrt.f32 %v1431_v8  ;;  %823 = vmatmul.msk.f32.vlgmr.msra.gmra.mxu0 %vm253_vm0, %v494_v24  ;;  %v329_v23 = vmul.f32 %v1442_v28, %v1396_v42  ;;  %v1470_v44 = vpop.eup %969  ;;  %v443_v50 = vmul.f32 %v1398_v45, %v442_v31  ;;  %v487_v56 = vmul.f32 10.0, %v417_v38 }
  0xab   : > { %v363_v33 = vmul.f32 %v1402_v49, %v362_v25  ;;  %v420_v34 = vmul.f32 %v1422_v10, %v419_v26  ;;  %973 = vrsqrt.f32 %v1433_v17  ;;  %v369_v52 = vmul.f32 %v1470_v44, %v1415_v59 }
  0xac   : > { %v330_v47 = vmul.f32 %v1442_v28, %v329_v23  ;;  %975 = vrsqrt.f32 %v1465_v36  ;;  %vm424_vm4 = vweird.f32 %v1394_v39  ;;  %vm425_vm5 = vweird.f32 %v1422_v10 }
  0xad   : > { %v421_v46 = vmul.f32 0.5, %v420_v34  ;;  %v367_v48 = vsel %vm1460_vm13, %v1402_v49, %v363_v33  ;;  %v502_v49 = vmul.f32 %v486_v5, %v1163_v1  ;;  %v370_v58 = vmul.f32 %v1470_v44, %v369_v52 }
  0xae   : > { %v331_v53 = vmul.f32 0.5, %v330_v47  ;;  %v482_v62 = vmul.f32 10.0, %v367_v48  ;;  %vm335_vm7 = vweird.f32 %v1442_v28  ;;  %vm375_vm8 = vweird.f32 %v1470_v44 }
  0xaf   : > { %v265_v54 = vpop.xlane.xlu2 %264  ;;  %v289_v55 = vpop.xlane.xlu0 %288  ;;  %v422_v63 = vsub.f32 1.5, %v421_v46  ;;  %831 = vmatmul.msk.f32.vlgmr.msra.gmra.mxu2 %vm253_vm0, %v502_v49  ;;  %v371_v13 = vmul.f32 0.5, %v370_v58  ;;  %v447_v16 = vsel %vm1502_vm6, %v1398_v45, %v443_v50  ;;  %v503_v26 = vmul.f32 %v487_v56, %v1160_v0  ;;  %vm1538_vm11 = vmor %vm334_vm15, %vm335_vm7 }
  0xb0   : > { %v1489_v57 = vpop.eup %971  ;;  %v1494_v60 = vmax.f32 %v265_v54, 1e-24  ;;  %v1496_v61 = vmax.f32 %v289_v55, 1e-24  ;;  %v332_v3 = vsub.f32 1.5, %v331_v53  ;;  %v301_v9 = vpop.xlane.xlu1 %300  ;;  %vm384_vm9 = vweird.f32 %v1431_v8  ;;  %vm1556_vm13 = vmor %vm374_vm3, %vm375_vm8 }
  0xb1   : > { %v379_v4 = vmul.f32 %v1489_v57, %v1431_v8  ;;  %v1510_v12 = vpop.eup %973  ;;  %v372_v31 = vsub.f32 1.5, %v371_v13  ;;  %v1526_v2 = vmax.f32 %v301_v9, 1e-24  ;;  %v498_v45 = vmul.f32 %v482_v62, %v1184_v11  ;;  %vm1578_vm3 = vmor %vm454_vm1, %vm455_vm2 }
  0xb2   : > { %977 = vrsqrt.f32 %v1494_v60  ;;  %v333_v22 = vmul.f32 %v1442_v28, %v332_v3  ;;  %v459_v25 = vmul.f32 %v1510_v12, %v1433_v17  ;;  %v1522_v27 = vpop.eup %975  ;;  %v423_v21 = vmul.f32 %v1422_v10, %v422_v63  ;;  %vm1591_vm8 = vmor %vm424_vm4, %vm425_vm5 }
  0xb3   : > { %v380_v24 = vmul.f32 %v1489_v57, %v379_v4  ;;  %979 = vrsqrt.f32 %v1496_v61  ;;  %v339_v23 = vmul.f32 %v1522_v27, %v1465_v36  ;;  %vm344_vm10 = vweird.f32 %v1465_v36  ;;  %827 = vmatmul.msk.f32.vlgmr.msra.gmra.mxu1 %vm253_vm0, %v498_v45 }
  0xb4   : > { %v460_v34 = vmul.f32 %v1510_v12, %v459_v25  ;;  %v373_v11 = vmul.f32 %v1470_v44, %v372_v31  ;;  %vm385_vm12 = vweird.f32 %v1489_v57  ;;  %981 = vrsqrt.f32 %v1526_v2 }
  0xb5   : > { %v381_v33 = vmul.f32 0.5, %v380_v24  ;;  %v490_v35 = vmul.f32 10.0, %v447_v16  ;;  %v340_v46 = vmul.f32 %v1522_v27, %v339_v23  ;;  %v337_v42 = vsel %vm1538_vm11, %v1442_v28, %v333_v22  ;;  %vm1624_vm5 = vmor %vm384_vm9, %vm385_vm12 }
  0xb6   : > { %v461_v38 = vmul.f32 0.5, %v460_v34  ;;  %vm464_vm14 = vweird.f32 %v1433_v17  ;;  %vm465_vm15 = vweird.f32 %v1510_v12  ;;  %vm354_vm6 = vweird.f32 %v1494_v60 }
  0xb7   : > { %v382_v5 = vsub.f32 1.5, %v381_v33  ;;  %v277_v47 = vpop.xlane.xlu0 %276  ;;  %v506_v52 = vmul.f32 %v490_v35, %v1178_v7  ;;  %v479_v28 = vmul.f32 10.0, %v337_v42  ;;  %v341_v54 = vmul.f32 0.5, %v340_v46  ;;  %832 = vmatmul.msk.f32.gmra.mxu2 %vm253_vm0, %v503_v26  ;;  %vm466_vm9 = vmor %vm464_vm14, %vm465_vm15 }
  0xb8   : > { %v1550_v48 = vpop.eup %977  ;;  %v1564_v53 = vmax.f32 %v277_v47, 1e-24  ;;  %v462_v49 = vsub.f32 1.5, %v461_v38  ;;  %v377_v55 = vsel %vm1556_vm13, %v1470_v44, %v373_v11  ;;  %vm345_vm7 = vweird.f32 %v1522_v27 }
  0xb9   : > { %v349_v59 = vmul.f32 %v1550_v48, %v1494_v60  ;;  %v1572_v56 = vpop.eup %979  ;;  %v383_v58 = vmul.f32 %v1489_v57, %v382_v5  ;;  %835 = vmatmul.msk.f32.vlgmr.msra.gmra.mxu3 %vm253_vm0, %v506_v52  ;;  %v495_v44 = vmul.f32 %v479_v28, %v1199_v19  ;;  %v342_v62 = vsub.f32 1.5, %v341_v54  ;;  %vm346_vm2 = vmor %vm344_vm10, %vm345_vm7 }
  0xba   : > { %983 = vrsqrt.f32 %v1564_v53  ;;  %vm355_vm1 = vweird.f32 %v1550_v48  ;;  %v429_v63 = vmul.f32 %v1572_v56, %v1496_v61  ;;  %v1599_v3 = vpop.eup %981  ;;  %v463_v19 = vmul.f32 %v1510_v12, %v462_v49 }
  0xbb   : > { %v350_v1 = vmul.f32 %v1550_v48, %v349_v59  ;;  %824 = vmatmul.msk.f32.gmra.mxu0 %vm253_vm0, %v495_v44  ;;  %v483_v4 = vmul.f32 10.0, %v377_v55  ;;  %v427_v39 = vsel %vm1591_vm8, %v1422_v10, %v423_v21  ;;  %v457_v9 = vsel %vm1578_vm3, %v1392_v37, %v1483_v14  ;;  %vm356_vm11 = vmor %vm354_vm6, %vm355_vm1 }
  0xbc   : > { %v343_v13 = vmul.f32 %v1522_v27, %v342_v62  ;;  %v430_v22 = vmul.f32 %v1572_v56, %v429_v63  ;;  %v469_v24 = vmul.f32 %v1599_v3, %v1526_v2  ;;  %vm435_vm4 = vweird.f32 %v1572_v56 }
  0xbd   : > { %v351_v16 = vmul.f32 0.5, %v350_v1  ;;  %v499_v10 = vmul.f32 %v483_v4, %v1202_v20  ;;  %v488_v25 = vmul.f32 10.0, %v427_v39  ;;  %v491_v26 = vmul.f32 10.0, %v457_v9 }
  0xbe   : > { %v431_v31 = vmul.f32 0.5, %v430_v22  ;;  %v470_v45 = vmul.f32 %v1599_v3, %v469_v24  ;;  %v347_v36 = vsel %vm346_vm2, %v1522_v27, %v343_v13  ;;  %v387_v8 = vsel %vm1624_vm5, %v1489_v57, %v383_v58 }
  0xbf   : > { %v352_v14 = vsub.f32 1.5, %v351_v16  ;;  %828 = vmatmul.msk.f32.gmra.mxu1 %vm253_vm0, %v499_v10  ;;  %v504_v20 = vmul.f32 %v488_v25, %v1196_v18  ;;  %v507_v33 = vmul.f32 %v491_v26, %v1175_v6  ;;  %v480_v34 = vmul.f32 10.0, %v347_v36 }
  0xc0   : > { %v984_v21 = vpop.eup %983  ;;  %v432_v27 = vsub.f32 1.5, %v431_v31  ;;  %v471_v0 = vmul.f32 0.5, %v470_v45  ;;  %vm475_vm10 = vweird.f32 %v1599_v3  ;;  %v484_v18 = vmul.f32 10.0, %v387_v8 }
  0xc1   : > { %v353_v23 = vmul.f32 %v1550_v48, %v352_v14  ;;  %v389_v11 = vmul.f32 %v984_v21, %v1564_v53  ;;  %833 = vmatmul.msk.f32.gmra.mxu2 %vm253_vm0, %v504_v20  ;;  %836 = vmatmul.msk.f32.gmra.mxu3 %vm253_vm0, %v507_v33  ;;  %v496_v6 = vmul.f32 %v480_v34, %v1236_v32  ;;  %vm434_vm12 = vweird.f32 %v1496_v61 }
  0xc2   : > { %v467_v57 = vsel %vm466_vm9, %v1510_v12, %v463_v19  ;;  %v433_v17 = vmul.f32 %v1572_v56, %v432_v27  ;;  %v472_v35 = vsub.f32 1.5, %v471_v0  ;;  %v500_v46 = vmul.f32 %v484_v18, %v1225_v29  ;;  %vm436_vm13 = vmor %vm434_vm12, %vm435_vm4 }
  0xc3   : > { %v390_v5 = vmul.f32 %v984_v21, %v389_v11  ;;  %v492_v38 = vmul.f32 10.0, %v467_v57  ;;  %825 = vmatmul.msk.f32.gmra.mxu0 %vm253_vm0, %v496_v6  ;;  %v357_v32 = vsel %vm356_vm11, %v1550_v48, %v353_v23  ;;  %vm474_vm14 = vweird.f32 %v1526_v2 }
  0xc4   : > { %v473_v12 = vmul.f32 %v1599_v3, %v472_v35  ;;  %v481_v47 = vmul.f32 10.0, %v357_v32  ;;  %vm476_vm15 = vmor %vm474_vm14, %vm475_vm10  ;;  %v437_v42 = vsel %vm436_vm13, %v1572_v56, %v433_v17  ;;  %vm395_vm6 = vweird.f32 %v984_v21 }
  0xc5   : > { %v391_v60 = vmul.f32 0.5, %v390_v5  ;;  %v508_v61 = vmul.f32 %v492_v38, %v1228_v30  ;;  %v489_v29 = vmul.f32 10.0, %v437_v42  ;;  %vm394_vm3 = vweird.f32 %v1564_v53 }
  0xc6   : > { %v477_v48 = vsel %vm476_vm15, %v1599_v3, %v473_v12  ;;  %v497_v52 = vmul.f32 %v481_v47, %v1257_v40  ;;  %vm396_vm7 = vmor %vm394_vm3, %vm395_vm6 }
  0xc7   : > { %v392_v50 = vsub.f32 1.5, %v391_v60  ;;  %829 = vmatmul.msk.f32.gmra.mxu1 %vm253_vm0, %v500_v46  ;;  %v505_v28 = vmul.f32 %v489_v29, %v1260_v41  ;;  %v493_v30 = vmul.f32 10.0, %v477_v48 }
  0xc9   : > { %v393_v2 = vmul.f32 %v984_v21, %v392_v50  ;;  %837 = vmatmul.msk.f32.gmra.mxu3 %vm253_vm0, %v508_v61  ;;  %834 = vmatmul.msk.f32.gmra.mxu2 %vm253_vm0, %v505_v28  ;;  %v509_v59 = vmul.f32 %v493_v30, %v1268_v43 }
  0xcb   : > { %v397_v49 = vsel %vm396_vm7, %v984_v21, %v393_v2  ;;  %826 = vmatmul.msk.f32.gmra.mxu0 %vm253_vm0, %v497_v52 }
  0xcc   : > { %v485_v54 = vmul.f32 10.0, %v397_v49 }
  0xce   : > { %v501_v55 = vmul.f32 %v485_v54, %v1289_v51 }
  0xd0   : > { %830 = vmatmul.msk.f32.gmra.mxu1 %vm253_vm0, %v501_v55 }
  0xd1   : > { %838 = vmatmul.msk.f32.gmra.mxu3 %vm253_vm0, %v509_v59 }
 0x127   : > { %v623_v40 = vpop.f32.mrf.mxu0 }
 0x128   : > { %671 = vst [vmem:[%s1678_s29] sm:$0xff] %v623_v40 }
 0x130   : > { %v635_v41 = vpop.f32.mrf.mxu1 }
 0x131   : > { %675 = vst [vmem:[%s1678_s29 + $0x20] sm:$0xff] %v635_v41 }
 0x132   : > { %v647_v43 = vpop.f32.mrf.mxu2 }
 0x133   : > { %679 = vst [vmem:[%s1678_s29 + $0x40] sm:$0xff] %v647_v43 }
 0x138   : > { %v626_v51 = vpop.f32.mrf.mxu0 }
 0x139   : > { %672 = vst [vmem:[%s1678_s29 + $0x8] sm:$0xff] %v626_v51 }
 0x13a   : > { %v650_v53 = vpop.f32.mrf.mxu2 }
 0x13b   : > { %680 = vst [vmem:[%s1678_s29 + $0x48] sm:$0xff] %v650_v53 }
 0x13c   : > { %v659_v56 = vpop.f32.mrf.mxu3  ;;  %v638_v7 = vpop.f32.mrf.mxu1 }
 0x13d   : > { %683 = vst [vmem:[%s1678_s29 + $0x60] sm:$0xff] %v659_v56 }
 0x13e   : > { %676 = vst [vmem:[%s1678_s29 + $0x28] sm:$0xff] %v638_v7 }
 0x140   : > { %v629_v58 = vpop.f32.mrf.mxu0 }
 0x141   : > { %673 = vst [vmem:[%s1678_s29 + $0x10] sm:$0xff] %v629_v58 }
 0x144   : > { %v653_v44 = vpop.f32.mrf.mxu2  ;;  %v662_v15 = vpop.f32.mrf.mxu3 }
 0x145   : > { %681 = vst [vmem:[%s1678_s29 + $0x50] sm:$0xff] %v653_v44  ;;  %v641_v62 = vpop.f32.mrf.mxu1 }
 0x146   : > { %684 = vst [vmem:[%s1678_s29 + $0x68] sm:$0xff] %v662_v15 }
 0x147   : > { %677 = vst [vmem:[%s1678_s29 + $0x30] sm:$0xff] %v641_v62 }
 0x148   : > { %v632_v1 = vpop.f32.mrf.mxu0 }
 0x149   : > { %674 = vst [vmem:[%s1678_s29 + $0x18] sm:$0xff] %v632_v1 }
 0x14c   : > { %v665_v63 = vpop.f32.mrf.mxu3  ;;  %v656_v3 = vpop.f32.mrf.mxu2 }
 0x14d   : > { %685 = vst [vmem:[%s1678_s29 + $0x70] sm:$0xff] %v665_v63  ;;  %v644_v19 = vpop.f32.mrf.mxu1 }
 0x14e   : > { %682 = vst [vmem:[%s1678_s29 + $0x58] sm:$0xff] %v656_v3 }
 0x14f   : > { %678 = vst [vmem:[%s1678_s29 + $0x38] sm:$0xff] %v644_v19 }
 0x151   : > { %694 = sbr.rel (!%p1134_p4) target bundleno = 373 (0x175), region = 32 }
 0x154   : > { %v668_v4 = vpop.f32.mrf.mxu3 }
 0x155   : > { %686 = vst [vmem:[%s1678_s29 + $0x78] sm:$0xff] %v668_v4 }
 0x156   : > { %s1796_s3 = smov (!%p697_p12, %s696_s3), 16 }
 0x157   : > { %s841_s4 = sshll.u32 %s1796_s3, 3 }
 0x158   : > { %s700_s5 = ssub.s32 128, %s841_s4 }
 0x159   : > { %s701_s6 = sshll.u32 %s700_s5, 4 }
 0x15a   : > { %702 = vsyncadd %s1698_s30, %s701_s6  ;;  %p1707_p13 = scmp.ne.s32.totalorder %s841_s4, 0  ;;  %s848_s19 = sshll.u32 %s1066_s12, 7 }
 0x15b   : > { %s706_s15 = scalar_lea.hbm %s1766_s2, %s848_s19  ;;  %s708_s16 = sshll.u32 %s1678_s29, 4  ;;  %s1716_s16 = int_to_ptr.vmem [resolvable:$true] %s708_s16 }
 0x15c   : > { %s710_s18 = sshll.u32 %s706_s15, 4  ;;  %s845_s20 = sshll.u32 %s1796_s3, 7  ;;  %s1718_s18 = int_to_ptr.hbm [resolvable:$true] %s710_s18 }
 0x15d   : > { %s985_s24 = sshra.s32 %s1716_s16, 4  ;;  %s987_s25 = sshrl.u32 %s845_s20, 4  ;;  %s986_s24 = int_to_ptr.vmem [resolvable:$true] %s985_s24 }
 0x15e   : > { %s992_s26 = scalar_lea.vmem %s986_s24, %s987_s25  ;;  %s1076_s12 = smov [#allocation2]  }
 0x15f   : > { %p993_p0 = scmp.ne.s32.totalorder %s986_s24, %s992_s26  ;;  %s996_s27 = scalar_lea.vmem %s1076_s12, 256 }
 0x160   : > { %p998_p3 = scmp.lt.s32.totalorder %s996_s27, %s992_s26 }
 0x161   : > { %p994_p1 = pnand %p993_p0, %p1707_p13 }
 0x163   : > { %p995_p2 = pneg %p994_p1 }
 0x165   : > { %p1000_p4 = pnand %p998_p3, %p995_p2 }
 0x167   : > { %1003 = shalt.err (!%p1000_p4)
}
 0x168   : > { %s1004_s28 = sshra.s32 %s1718_s18, 4  ;;  %s1015_s6 = scalar_lea.hbm %s1766_s2, 200  ;;  %s1005_s28 = int_to_ptr.hbm [resolvable:$true] %s1004_s28 }
 0x169   : > { %s1011_s29 = scalar_lea.hbm %s1005_s28, %s987_s25  ;;  %p1016_p9 = scmp.lt.s32.totalorder %s1005_s28, %s1766_s2 }
 0x16a   : > { %p1012_p5 = scmp.ne.s32.totalorder %s1005_s28, %s1011_s29  ;;  %p1017_p10 = scmp.lt.s32.totalorder %s1015_s6, %s1011_s29 }
 0x16c   : > { %p1013_p6 = pnand %p1012_p5, %p1707_p13  ;;  %p1018_p11 = por %p1017_p10, %p1016_p9 }
 0x16e   : > { %p1014_p7 = pneg %p1013_p6 }
 0x170   : > { %p1019_p12 = pnand %p1018_p11, %p1014_p7 }
 0x172   : > { %1022 = shalt.err (!%p1019_p12)
}
 0x173   : > { %s1077_s23 = smov 128   ;;  %s1078_s15 = smov 8  }
 0x174   : > { %716 = dma.vmem_to_hbm [thread:$0]  (%p1707_p13), %s1716_s16, %s845_s20, %s1718_s18, %s1698_s30, %s1077_s23, %s1077_s23, %s1078_s15  }
 0x175 PF: > { %p902_p0 = scmp.ge.s32.totalorder %s1074_s14, 2  ;;  %s725_s24 = sand.u32 1, %s1054_s9  }
 0x176   : > { %s726_s25 = scalar_lea.sflag [#allocation3], %s725_s24 }
 0x177   : > { %p899_p1 = pnand %p902_p0, %p1141_p8 }
 0x179   : > { %p900_p2 = pneg %p899_p1 }
 0x17b   : > { %1049 = dma.done.wait (%p900_p2), %s726_s25, 2048  }
 0x17c   : > { %1051 = vsyncadd (%p900_p2), %s726_s25, 4294965248  ;;  %s15_s14 = sadd.s32 1, %s1074_s14   ;;  %s1788_s9 = smov %s1058_s10 }
 0x17d   : > { %p12_p3 = scmp.ge.s32.totalorder %s15_s14, 4   ;;  %s1789_s10 = smov %s1062_s11 }
 0x17e   : > { %s1790_s11 = smov %s1147_s22  ;;  %s1791_s12 = smov %s1070_s13 }
 0x17f   : > { %s1792_s13 = smov %s1794_s17  ;;  %14 = sbr.rel (!%p12_p3) target bundleno = 4 (0x4), region = 66 }
 0x184   :  { %732 = vsyncpa [#allocation3], 1 }
 0x185   :  { %734 = vsyncpa [#allocation3 + $0x1], 1 }

</bundles_post_ra>
